<compile_context>
chip_gen: v7x
topology: tpu7x:2x2x1
jax: 0.10.0
libtpu: 0.0.40
codegen_flags: <defaults>
</compile_context>

<pallas_src>
import functools

import jax
import jax.numpy as jnp
from jax import lax
from jax.experimental import pallas as pl
from jax.experimental.pallas import tpu as pltpu


def _residual_kernel(seed_ref, x_ref, alpha_ref, beta_ref, w_ref, b_ref, o_ref,
                     *, eps: float, dropout_p: float, features: int,
                     tile_rows: int):
    x = x_ref[...].astype(jnp.float32)                       # (T, F)
    f = features

    # ---- LayerNormalization (torch-style: unbiased std, divide by std + eps) ----
    mean = jnp.mean(x, axis=-1, keepdims=True)
    xc = x - mean
    denom = float(f - 1) if f > 1 else 1.0
    var_unbiased = jnp.sum(xc * xc, axis=-1, keepdims=True) * (1.0 / denom)
    # One reciprocal per ROW fused into the scale (no per-element divide).
    inv = 1.0 / (jnp.sqrt(var_unbiased) + eps)                # (T, 1)
    normed = xc * (alpha_ref[...] * inv) + beta_ref[...]      # (T, F)

    # ---- sublayer: dense projection on the MXU (bf16 inputs, f32 accumulate) ----
    y = jnp.dot(normed.astype(w_ref.dtype), w_ref[...],
                preferred_element_type=jnp.float32)
    y = y + b_ref[...]

    # ---- dropout (training-mode, inverted scaling) ----
    # Stateless counter-based hash (lowbias32) of the GLOBAL element index + seed.
    # Integer-domain keep test: no float convert / scaling of random bits, and no
    # serial PRNG state -> the row grid axis is safely "parallel".
    if dropout_p > 0.0:
        row = (lax.broadcasted_iota(jnp.int32, y.shape, 0)
               + pl.program_id(0) * tile_rows)
        col = lax.broadcasted_iota(jnp.int32, y.shape, 1)
        h = (row * f + col).astype(jnp.uint32)
        h = h + seed_ref[0].astype(jnp.uint32) * jnp.uint32(0x9E3779B9)
        h = h ^ (h >> jnp.uint32(16))
        h = h * jnp.uint32(0x7FEB352D)
        h = h ^ (h >> jnp.uint32(15))
        h = h * jnp.uint32(0x846CA68B)
        h = h ^ (h >> jnp.uint32(16))
        thresh = jnp.uint32(min(int(round(dropout_p * 4294967296.0)), 0xFFFFFFFF))
        keep = h >= thresh                                    # P(keep) = 1 - p
        y = jnp.where(keep, y * (1.0 / (1.0 - dropout_p)), 0.0)

    # ---- residual add ----
    o_ref[...] = (x + y).astype(o_ref.dtype)


def residual_connection(x, alpha, beta, w, b, *, eps=1e-6, dropout_p=0.1,
                        seed=0, tile_rows=512, matmul_dtype=jnp.bfloat16):
    """x: (B, S, F) float32.  Returns x + dropout(linear(layernorm(x)))."""
    B, S, F = x.shape
    rows = B * S
    w_bytes = jnp.dtype(matmul_dtype).itemsize

    # --- Row-tile sizing: biggest tile that keeps the MXU fed while the
    #     (double-buffered) working set fits a conservative VMEM budget. ---
    budget = 20 * 1024 * 1024                      # conservative across v5e/v6e/v7x
    fixed = 2 * F * F * w_bytes + 6 * F * 4        # W (double-buffered) + alpha/beta/b
    per_row = 2 * (F * 4) * 2                      # x + out tiles, double-buffered, f32
    max_rows_by_vmem = max(8, (budget - fixed) // per_row) if fixed < budget else 8
    # TODO(synk): for very large F (W alone over budget) add an N/K grid axis over W
    # instead of keeping the full FxF block resident.

    tile_rows = max(8, min(int(tile_rows), int(max_rows_by_vmem),
                           ((rows + 7) // 8) * 8))
    tile_rows = (tile_rows // 8) * 8
    padded_rows = pl.cdiv(rows, tile_rows) * tile_rows

    x2 = x.reshape(rows, F)
    if padded_rows != rows:
        x2 = jnp.pad(x2, ((0, padded_rows - rows), (0, 0)))

    alpha2 = alpha.reshape(1, F).astype(jnp.float32)
    beta2 = beta.reshape(1, F).astype(jnp.float32)
    b2 = b.reshape(1, F).astype(jnp.float32)
    w2 = w.astype(matmul_dtype)        # bf16 by default: halves W's VMEM/DMA footprint
    seed_arr = jnp.array([seed], dtype=jnp.int32)

    kernel = functools.partial(_residual_kernel, eps=float(eps),
                               dropout_p=float(dropout_p), features=F,
                               tile_rows=tile_rows)

    grid = (padded_rows // tile_rows,)

    # Scoped VMEM: enough for the working set + intermediates, capped at 48 MiB so the
    # setting stays legal on v7x's 64 MiB-per-TC VMEM (and is fine on v5e/v6e).
    vmem_need = fixed + per_row * tile_rows
    vmem_limit = int(min(max(2 * vmem_need, 32 * 1024 * 1024), 48 * 1024 * 1024))

    out = pl.pallas_call(
        kernel,
        out_shape=jax.ShapeDtypeStruct((padded_rows, F), x.dtype),
        grid_spec=pltpu.PrefetchScalarGridSpec(
            num_scalar_prefetch=1,
            grid=grid,
            in_specs=[
                pl.BlockSpec((tile_rows, F), lambda i, seed: (i, 0)),  # x tile
                pl.BlockSpec((1, F), lambda i, seed: (0, 0)),          # alpha
                pl.BlockSpec((1, F), lambda i, seed: (0, 0)),          # beta
                pl.BlockSpec((F, F), lambda i, seed: (0, 0)),          # W
                pl.BlockSpec((1, F), lambda i, seed: (0, 0)),          # b
            ],
            out_specs=pl.BlockSpec((tile_rows, F), lambda i, seed: (i, 0)),
        ),
        compiler_params=pltpu.CompilerParams(
            dimension_semantics=("parallel",),   # stateless dropout hash -> order-free
            vmem_limit_bytes=vmem_limit,
        ),
    )(seed_arr, x2, alpha2, beta2, w2, b2)

    out = out[:rows]
    return out.reshape(B, S, F)


if __name__ == "__main__":
    B, S, F = 2, 8, 32
    key = jax.random.PRNGKey(0)
    kx, kw, kb = jax.random.split(key, 3)

    x = jax.random.normal(kx, (B, S, F), dtype=jnp.float32)

    # LayerNormalization params (torch init: ones / zeros)
    alpha = jnp.ones((F,), dtype=jnp.float32)
    beta = jnp.zeros((F,), dtype=jnp.float32)

    # Concrete sublayer = Linear(F, F), deterministic init
    w = jax.random.normal(kw, (F, F), dtype=jnp.float32) / jnp.sqrt(F)
    b = jax.random.normal(kb, (F,), dtype=jnp.float32) * 0.01

    # Fast default path: bf16 MXU matmul + dropout.
    out = residual_connection(x, alpha, beta, w, b, eps=1e-6, dropout_p=0.1, seed=0)
    out = jax.block_until_ready(out)
    assert out.shape == (B, S, F)
    assert bool(jnp.all(jnp.isfinite(out)))

    # Dropout drops some (not all) elements: dropped positions leave the residual
    # untouched, i.e. out == x exactly.
    frac_dropped = float(jnp.mean((out == x).astype(jnp.float32)))
    assert 0.0 < frac_dropped < 0.5, frac_dropped

    # Exactness check (dropout off, fp32 matmul) against a pure-JAX reference.
    out_nodrop = jax.block_until_ready(
        residual_connection(x, alpha, beta, w, b, eps=1e-6, dropout_p=0.0,
                            matmul_dtype=jnp.float32))
    mean = jnp.mean(x, axis=-1, keepdims=True)
    std = jnp.sqrt(jnp.sum((x - mean) ** 2, axis=-1, keepdims=True) / (F - 1))
    normed = alpha * (x - mean) / (std + 1e-6) + beta
    ref = x + (jnp.einsum("bsf,fg->bsg", normed, w) + b)
    assert jnp.allclose(out_nodrop, ref, atol=1e-4, rtol=1e-4), float(
        jnp.max(jnp.abs(out_nodrop - ref)))

    print("KERNEL_OK")
</pallas_src>

<mosaic_0001>
module attributes {stable_mosaic.version = 11 : i64} {
  func.func @_residual_kernel(%arg0: i32, %arg1: memref<1xi32, #tpu.memory_space<smem>>, %arg2: memref<16x32xf32, #tpu.memory_space<vmem>>, %arg3: memref<1x32xf32, #tpu.memory_space<vmem>>, %arg4: memref<1x32xf32, #tpu.memory_space<vmem>>, %arg5: memref<32x32xbf16, #tpu.memory_space<vmem>>, %arg6: memref<1x32xf32, #tpu.memory_space<vmem>>, %arg7: memref<16x32xf32, #tpu.memory_space<vmem>>) attributes {dimension_semantics = [#tpu.dimension_semantics<parallel>], iteration_bounds = array<i64: 1>, scalar_prefetch = 1 : i64, scratch_operands = 0 : i64, tpu.core_type = #tpu.core_type<tc>, window_params = [{transform_indices = @transform_0, window_bounds = array<i64: 16, 32>}, {pipeline_mode = #tpu.pipeline_mode<synchronous>, transform_indices = @transform_1, window_bounds = array<i64: 1, 32>}, {pipeline_mode = #tpu.pipeline_mode<synchronous>, transform_indices = @transform_2, window_bounds = array<i64: 1, 32>}, {pipeline_mode = #tpu.pipeline_mode<synchronous>, transform_indices = @transform_3, window_bounds = array<i64: 32, 32>}, {pipeline_mode = #tpu.pipeline_mode<synchronous>, transform_indices = @transform_4, window_bounds = array<i64: 1, 32>}, {transform_indices = @transform_5, window_bounds = array<i64: 16, 32>}]} {
    %c0 = arith.constant 0 : index
    %c0_0 = arith.constant 0 : index
    %0 = vector.load %arg2[%c0, %c0_0] : memref<16x32xf32, #tpu.memory_space<vmem>>, vector<16x32xf32>
    %cst = arith.constant dense<0.000000e+00> : vector<16xf32>
    %1 = vector.multi_reduction <add>, %0, %cst [1] : vector<16x32xf32> to vector<16xf32>
    %2 = vector.shape_cast %1 : vector<16xf32> to vector<16x1xf32>
    %cst_1 = arith.constant 3.200000e+01 : f32
    %3 = vector.broadcast %cst_1 : f32 to vector<16x1xf32>
    %4 = arith.divf %2, %3 : vector<16x1xf32>
    %5 = vector.broadcast %4 : vector<16x1xf32> to vector<16x32xf32>
    %6 = arith.subf %0, %5 : vector<16x32xf32>
    %7 = arith.mulf %6, %6 : vector<16x32xf32>
    %cst_2 = arith.constant dense<0.000000e+00> : vector<16xf32>
    %8 = vector.multi_reduction <add>, %7, %cst_2 [1] : vector<16x32xf32> to vector<16xf32>
    %9 = vector.shape_cast %8 : vector<16xf32> to vector<16x1xf32>
    %cst_3 = arith.constant 0.0322580636 : f32
    %10 = vector.broadcast %cst_3 : f32 to vector<16x1xf32>
    %11 = arith.mulf %9, %10 : vector<16x1xf32>
    %12 = math.sqrt %11 : vector<16x1xf32>
    %cst_4 = arith.constant 9.99999997E-7 : f32
    %13 = vector.broadcast %cst_4 : f32 to vector<16x1xf32>
    %14 = arith.addf %12, %13 : vector<16x1xf32>
    %cst_5 = arith.constant 1.000000e+00 : f32
    %15 = vector.broadcast %cst_5 : f32 to vector<16x1xf32>
    %16 = arith.divf %15, %14 : vector<16x1xf32>
    %c0_6 = arith.constant 0 : index
    %c0_7 = arith.constant 0 : index
    %17 = vector.load %arg3[%c0_6, %c0_7] : memref<1x32xf32, #tpu.memory_space<vmem>>, vector<1x32xf32>
    %18 = vector.broadcast %17 : vector<1x32xf32> to vector<16x32xf32>
    %19 = vector.broadcast %16 : vector<16x1xf32> to vector<16x32xf32>
    %20 = arith.mulf %18, %19 : vector<16x32xf32>
    %21 = arith.mulf %6, %20 : vector<16x32xf32>
    %c0_8 = arith.constant 0 : index
    %c0_9 = arith.constant 0 : index
    %22 = vector.load %arg4[%c0_8, %c0_9] : memref<1x32xf32, #tpu.memory_space<vmem>>, vector<1x32xf32>
    %23 = vector.broadcast %22 : vector<1x32xf32> to vector<16x32xf32>
    %24 = arith.addf %21, %23 : vector<16x32xf32>
    %25 = arith.truncf %24 : vector<16x32xf32> to vector<16x32xbf16>
    %c0_10 = arith.constant 0 : index
    %c0_11 = arith.constant 0 : index
    %26 = vector.load %arg5[%c0_10, %c0_11] : memref<32x32xbf16, #tpu.memory_space<vmem>>, vector<32x32xbf16>
    %cst_12 = arith.constant dense<0.000000e+00> : vector<16x32xf32>
    %27 = tpu.matmul %25, %26, %cst_12 {dimension_numbers = #tpu.dot_dimension_numbers<[1], [0], [0], [1], [0, 0, 1, 1], [], []>} : vector<16x32xbf16>, vector<32x32xbf16>, vector<16x32xf32> -> vector<16x32xf32>
    %c0_13 = arith.constant 0 : index
    %c0_14 = arith.constant 0 : index
    %28 = vector.load %arg6[%c0_13, %c0_14] : memref<1x32xf32, #tpu.memory_space<vmem>>, vector<1x32xf32>
    %29 = vector.broadcast %28 : vector<1x32xf32> to vector<16x32xf32>
    %30 = arith.addf %27, %29 : vector<16x32xf32>
    %31 = tpu.iota {dimensions = array<i32: 0>} : vector<16x32xi32>
    %c16_i32 = arith.constant 16 : i32
    %32 = arith.muli %arg0, %c16_i32 : i32
    %33 = vector.broadcast %32 : i32 to vector<16x32xi32>
    %34 = arith.addi %31, %33 : vector<16x32xi32>
    %35 = tpu.iota {dimensions = array<i32: 1>} : vector<16x32xi32>
    %c32_i32 = arith.constant 32 : i32
    %36 = vector.broadcast %c32_i32 : i32 to vector<16x32xi32>
    %37 = arith.muli %34, %36 : vector<16x32xi32>
    %38 = arith.addi %37, %35 : vector<16x32xi32>
    %c0_15 = arith.constant 0 : index
    %39 = memref.load %arg1[%c0_15] : memref<1xi32, #tpu.memory_space<smem>>
    %c-1640531527_i32 = arith.constant -1640531527 : i32
    %40 = arith.muli %39, %c-1640531527_i32 : i32
    %41 = vector.broadcast %40 : i32 to vector<16x32xi32>
    %42 = arith.addi %38, %41 : vector<16x32xi32>
    %c16_i32_16 = arith.constant 16 : i32
    %43 = vector.broadcast %c16_i32_16 : i32 to vector<16x32xi32>
    %44 = arith.shrui %42, %43 : vector<16x32xi32>
    %45 = arith.xori %42, %44 : vector<16x32xi32>
    %c2146121005_i32 = arith.constant 2146121005 : i32
    %46 = vector.broadcast %c2146121005_i32 : i32 to vector<16x32xi32>
    %47 = arith.muli %45, %46 : vector<16x32xi32>
    %c15_i32 = arith.constant 15 : i32
    %48 = vector.broadcast %c15_i32 : i32 to vector<16x32xi32>
    %49 = arith.shrui %47, %48 : vector<16x32xi32>
    %50 = arith.xori %47, %49 : vector<16x32xi32>
    %c-2073254261_i32 = arith.constant -2073254261 : i32
    %51 = vector.broadcast %c-2073254261_i32 : i32 to vector<16x32xi32>
    %52 = arith.muli %50, %51 : vector<16x32xi32>
    %c16_i32_17 = arith.constant 16 : i32
    %53 = vector.broadcast %c16_i32_17 : i32 to vector<16x32xi32>
    %54 = arith.shrui %52, %53 : vector<16x32xi32>
    %55 = arith.xori %52, %54 : vector<16x32xi32>
    %c429496730_i32 = arith.constant 429496730 : i32
    %56 = vector.broadcast %c429496730_i32 : i32 to vector<16x32xi32>
    %57 = arith.cmpi uge, %55, %56 : vector<16x32xi32>
    %cst_18 = arith.constant 1.11111116 : f32
    %58 = vector.broadcast %cst_18 : f32 to vector<16x32xf32>
    %59 = arith.mulf %30, %58 : vector<16x32xf32>
    %cst_19 = arith.constant 0.000000e+00 : f32
    %60 = vector.broadcast %cst_19 : f32 to vector<16x32xf32>
    %61 = arith.select %57, %59, %60 : vector<16x32xi1>, vector<16x32xf32>
    %62 = arith.addf %0, %61 : vector<16x32xf32>
    %c0_20 = arith.constant 0 : index
    %c0_21 = arith.constant 0 : index
    %63 = vector.load %arg7[%c0_20, %c0_21] : memref<16x32xf32, #tpu.memory_space<vmem>>, vector<16x32xf32>
    tpu.vector_store %arg7[%c0_20, %c0_21], %62 {strides = array<i32>} : memref<16x32xf32, #tpu.memory_space<vmem>>, vector<16x32xf32>,
    return
  }
  func.func @transform_0(%arg0: i32, %arg1: memref<1xi32, #tpu.memory_space<smem>>) -> (i32, i32) {
    %c0_i32 = arith.constant 0 : i32
    %c0_i32_0 = arith.constant 0 : i32
    return %arg0, %c0_i32 : i32, i32
  }
  func.func @transform_1(%arg0: i32, %arg1: memref<1xi32, #tpu.memory_space<smem>>) -> (i32, i32) {
    %c0_i32 = arith.constant 0 : i32
    %c0_i32_0 = arith.constant 0 : i32
    %c0_i32_1 = arith.constant 0 : i32
    return %c0_i32, %c0_i32_0 : i32, i32
  }
  func.func @transform_2(%arg0: i32, %arg1: memref<1xi32, #tpu.memory_space<smem>>) -> (i32, i32) {
    %c0_i32 = arith.constant 0 : i32
    %c0_i32_0 = arith.constant 0 : i32
    %c0_i32_1 = arith.constant 0 : i32
    return %c0_i32, %c0_i32_0 : i32, i32
  }
  func.func @transform_3(%arg0: i32, %arg1: memref<1xi32, #tpu.memory_space<smem>>) -> (i32, i32) {
    %c0_i32 = arith.constant 0 : i32
    %c0_i32_0 = arith.constant 0 : i32
    %c0_i32_1 = arith.constant 0 : i32
    return %c0_i32, %c0_i32_0 : i32, i32
  }
  func.func @transform_4(%arg0: i32, %arg1: memref<1xi32, #tpu.memory_space<smem>>) -> (i32, i32) {
    %c0_i32 = arith.constant 0 : i32
    %c0_i32_0 = arith.constant 0 : i32
    %c0_i32_1 = arith.constant 0 : i32
    return %c0_i32, %c0_i32_0 : i32, i32
  }
  func.func @transform_5(%arg0: i32, %arg1: memref<1xi32, #tpu.memory_space<smem>>) -> (i32, i32) {
    %c0_i32 = arith.constant 0 : i32
    %c0_i32_0 = arith.constant 0 : i32
    return %arg0, %c0_i32 : i32, i32
  }
}

</mosaic_0001>

<bundles_post_ra>
// kernel: tpu_custom_call.1
= control target key start
LH: loop header
LB: loop body
LE: loop exit
PB: predicated region body
PF: predicated region fallthrough
CT: control target
= control target key end

     0   :  { %12 = vsyncpa [#allocation5], 0  ;;  %s469_s0 = inlined_call_operand.<no memory space> [shape: s32[1], index: 0, kind: input, shape index: {}]   ;;  %s470_s1 = inlined_call_operand.hbm [shape: f32[16,32], index: 1, kind: input, shape index: {}]   ;;  %s471_s2 = inlined_call_operand.vmem [shape: f32[1,32], index: 2, kind: input, shape index: {}]   ;;  %s472_s3 = inlined_call_operand.vmem [shape: f32[1,32], index: 3, kind: input, shape index: {}]   ;;  %s473_s4 = inlined_call_operand.hbm [shape: bf16[32,32], index: 4, kind: input, shape index: {}]   ;;  %s474_s5 = inlined_call_operand.vmem [shape: f32[1,32], index: 5, kind: input, shape index: {}]   ;;  %s475_s6 = inlined_call_operand.hbm [shape: f32[16,32], index: 6, kind: output, shape index: {}]  }
   0x1   :  { %13 = vsyncpa [#allocation8], 0 }
   0x2   :  { %14 = vsyncpa [#allocation6], 0  ;;  %s354_s21 = smov [#allocation4]   ;;  %s282_s25 = scalar_lea.hbm %s470_s1, 256 }
   0x3   :  { %s20_s22 = sshll.u32 %s354_s21, 4  ;;  %p283_p0 = scmp.ne.s32.totalorder %s470_s1, %s282_s25  ;;  %s21_s22 = int_to_ptr.vmem [resolvable:$true] %s20_s22 }
   0x4   :  { %p286_p1 = scmp.lt.u32.totalorder %s282_s25, %s470_s1 }
   0x6   :  { %p288_p2 = pnand %p286_p1, %p283_p0 }
   0x8   :  { %291 = shalt.err (!%p288_p2)
}
   0x9   :  { %s292_s30 = scalar_lea.vmem %s21_s22, 256  ;;  %p297_p4 = scmp.lt.s32.totalorder %s21_s22, %s21_s22 }
   0xa   :  { %p293_p3 = scmp.ne.s32.totalorder %s21_s22, %s292_s30  ;;  %p298_p5 = scmp.lt.s32.totalorder %s292_s30, %s292_s30 }
   0xc   :  { %p299_p6 = por %p298_p5, %p297_p4 }
   0xe   :  { %p300_p7 = pnand %p299_p6, %p293_p3 }
  0x10   :  { %303 = shalt.err (!%p300_p7)
}
  0x11   :  { %s355_s7 = smov 128   ;;  %s356_s8 = smov 8  }
  0x12   :  { %26 = dma.hbm_to_vmem [thread:$0]  %s470_s1, 256, %s21_s22, [#allocation5], %s355_s7, %s355_s7, %s356_s8  }
  0x13   :  { %s357_s11 = smov [#allocation7]   ;;  %s304_s15 = scalar_lea.hbm %s473_s4, 256 }
  0x14   :  { %s36_s12 = sshll.u32 %s357_s11, 4  ;;  %p305_p8 = scmp.ne.s32.totalorder %s473_s4, %s304_s15  ;;  %s37_s12 = int_to_ptr.vmem [resolvable:$true] %s36_s12 }
  0x15   :  { %p308_p9 = scmp.lt.u32.totalorder %s304_s15, %s473_s4 }
  0x17   :  { %p310_p10 = pnand %p308_p9, %p305_p8 }
  0x19   :  { %313 = shalt.err (!%p310_p10)
}
  0x1a   :  { %s314_s20 = scalar_lea.vmem %s37_s12, 256  ;;  %p319_p12 = scmp.lt.s32.totalorder %s37_s12, %s37_s12 }
  0x1b   :  { %p315_p11 = scmp.ne.s32.totalorder %s37_s12, %s314_s20  ;;  %p320_p13 = scmp.lt.s32.totalorder %s314_s20, %s314_s20 }
  0x1d   :  { %p321_p0 = por %p320_p13, %p319_p12 }
  0x1f   :  { %p322_p1 = pnand %p321_p0, %p315_p11 }
  0x21   :  { %325 = shalt.err (!%p322_p1)
}
  0x22   :  { %s358_s1 = smov 64   ;;  %s359_s21 = smov 4  }
  0x23   :  { %42 = dma.hbm_to_vmem [thread:$0]  %s473_s4, 256, %s37_s12, [#allocation8], %s358_s1, %s358_s1, %s359_s21  }
  0x24   :  { %348 = dma.done.wait [#allocation5], 256  }
  0x25   :  { %349 = vsyncadd [#allocation5], 4294967040 }
  0x26   :  { %350 = dma.done.wait [#allocation8], 256  }
  0x27   :  { %351 = vsyncadd [#allocation8], 4294967040  ;;  %vm54_vm0 = vcmask 261120   ;;  %v425_v0 = vld [vmem:[#allocation4] sm:$0xff]  ;;  %v427_v1 = vld [vmem:[#allocation4 + $0x8] sm:$0xff]  ;;  %v360_v15 = vmov 0.0   ;;  %v184_v44 = vlaneseq }
  0x28   :  { %v55_v2 = vsel %vm54_vm0, %v425_v0, 0.0  ;;  %v58_v3 = vsel %vm54_vm0, %v427_v1, 0.0  ;;  %v272_v14 = vld [vmem:[#allocation7] sm:$0xff]   ;;  %255 = vmatprep.subr.bf16.mxu0 %v360_v15  ;;  %vm361_vm1 = vmmov 0   ;;  %v273_v16 = vld [vmem:[#allocation7 + $0x8] sm:$0xff]   ;;  %s362_s29 = smov [#allocation9]  }
  0x29   :  { %56 = vadd.xlane.f32.xlu0 %v55_v2  ;;  %259 = vmatprep.mubr.msk.bf16.mxu0 %vm361_vm1, %v360_v15  ;;  %v246_v33 = vld [vmem:[%s471_s2] ss:$0 sm:$0xff]  ;;  %v185_v45 = vshrl.u32 %v184_v44, 7  ;;  %v192_v47 = vand.u32 127, %v184_v44  ;;  %s198_s28 = smul.u32 2654435769, %s469_s0 }
  0x2a   :  { %256 = vmatpush3.bf16.msra.mxu0 %v272_v14  ;;  %v247_v39 = vld [vmem:[%s472_s3] ss:$0 sm:$0xff]  ;;  %s233_s30 = sshll.u32 %s362_s29, 4  ;;  %s234_s30 = int_to_ptr.vmem [resolvable:$true] %s233_s30 }
  0x2b   :  { %257 = vmatprep.subr.bf16.mxu0 %v360_v15  ;;  %v186_v46 = vadd.s32 8, %v185_v45  ;;  %v193_v48 = vmul.u32 32, %v185_v45  ;;  %v199_v51 = vstv %s198_s28  ;;  %p331_p3 = scmp.lt.s32.totalorder %s234_s30, %s234_s30 }
  0x2d   :  { %59 = vadd.xlane.f32.xlu0 %v58_v3  ;;  %v194_v49 = vmul.u32 32, %v186_v46  ;;  %v195_v50 = vadd.s32 %v193_v48, %v192_v47 }
  0x2e   :  { %258 = vmatpush3.bf16.msra.mxu0 %v273_v16 }
  0x2f   :  { %v196_v52 = vadd.s32 %v194_v49, %v192_v47  ;;  %v200_v53 = vadd.s32 %v199_v51, %v195_v50 }
  0x31   :  { %v201_v54 = vadd.s32 %v199_v51, %v196_v52  ;;  %v202_v55 = vshrl.u32 %v200_v53, 16 }
  0x33   :  { %v203_v56 = vshrl.u32 %v201_v54, 16  ;;  %v204_v57 = vxor.u32 %v202_v55, %v200_v53 }
  0x35   :  { %v205_v58 = vxor.u32 %v203_v56, %v201_v54  ;;  %v206_v59 = vmul.u32 2146121005, %v204_v57 }
  0x37   :  { %v207_v60 = vmul.u32 2146121005, %v205_v58  ;;  %v208_v61 = vshrl.u32 %v206_v59, 15 }
  0x39   :  { %v209_v62 = vshrl.u32 %v207_v60, 15  ;;  %v210_v63 = vxor.u32 %v208_v61, %v206_v59 }
  0x3b   :  { %v211_v2 = vxor.u32 %v209_v62, %v207_v60  ;;  %v212_v3 = vmul.u32 2221713035, %v210_v63 }
  0xb6   :  { %v57_v4 = vpop.xlane.xlu0 %56 }
  0xb7   :  { %v62_v5 = vmul.f32 0.03125, %v57_v4  ;;  %v213_v4 = vmul.u32 2221713035, %v211_v2 }
  0xb9   :  { %v64_v6 = vsub.f32 %v425_v0, %v62_v5  ;;  %v214_v5 = vshrl.u32 %v212_v3, 16 }
  0xba   :  { %v60_v7 = vpop.xlane.xlu0 %59 }
  0xbb   :  { %v63_v8 = vmul.f32 0.03125, %v60_v7  ;;  %v66_v9 = vmul.f32 %v64_v6, %v64_v6  ;;  %v248_v7 = vld [vmem:[%s474_s5] ss:$0 sm:$0xff]  ;;  %s326_s5 = scalar_lea.vmem %s234_s30, 256 }
  0xbc   :  { %p327_p2 = scmp.ne.s32.totalorder %s234_s30, %s326_s5  ;;  %p332_p4 = scmp.lt.s32.totalorder %s326_s5, %s326_s5 }
  0xbd   :  { %v65_v10 = vsub.f32 %v427_v1, %v63_v8  ;;  %v68_v11 = vsel %vm54_vm0, %v66_v9, 0.0  ;;  %v216_v8 = vxor.u32 %v214_v5, %v212_v3 }
  0xbe   :  { %69 = vadd.xlane.f32.xlu1 %v68_v11  ;;  %p333_p5 = por %p332_p4, %p331_p3 }
  0xbf   :  { %v67_v12 = vmul.f32 %v65_v10, %v65_v10  ;;  %vm218_vm6 = vcmp.ge.u32.totalorder %v216_v8, 429496730 }
  0xc0   :  { %p334_p6 = pnand %p333_p5, %p327_p2 }
  0xc1   :  { %v71_v13 = vsel %vm54_vm0, %v67_v12, 0.0 }
  0xc2   :  { %72 = vadd.xlane.f32.xlu1 %v71_v13 }
 0x14b   :  { %v70_v17 = vpop.xlane.xlu1 %69 }
 0x14c   :  { %v74_v18 = vmul.f32 0.032258064, %v70_v17 }
 0x14e   :  { %274 = vrsqrt.f32 %v74_v18  ;;  %vm78_vm2 = vcmp.eq.f32.partialorder %v74_v18, inf  ;;  %v81_v23 = vand.u32 2147483648, %v74_v18  ;;  %vm80_vm3 = vcmp.eq.f32.partialorder %v74_v18, 0.0 }
 0x14f   :  { %v73_v19 = vpop.xlane.xlu1 %72 }
 0x150   :  { %v75_v20 = vmul.f32 0.032258064, %v73_v19 }
 0x152   :  { %276 = vrsqrt.f32 %v75_v20  ;;  %vm85_vm4 = vcmp.eq.f32.partialorder %v75_v20, inf  ;;  %v88_v29 = vand.u32 2147483648, %v75_v20  ;;  %vm87_vm5 = vcmp.eq.f32.partialorder %v75_v20, 0.0 }
 0x158   :  { %v275_v21 = vpop.eup %274 }
 0x159   :  { %v77_v22 = vmul.f32 %v275_v21, %v74_v18 }
 0x15b   :  { %v79_v24 = vsel %vm78_vm2, %v74_v18, %v77_v22 }
 0x15c   :  { %v277_v25 = vpop.eup %276  ;;  %v82_v26 = vsel %vm80_vm3, %v81_v23, %v79_v24 }
 0x15d   :  { %v90_v27 = vadd.f32 1e-06, %v82_v26  ;;  %v84_v28 = vmul.f32 %v277_v25, %v75_v20 }
 0x15f   :  { %278 = vrcp.f32 %v90_v27  ;;  %v86_v30 = vsel %vm85_vm4, %v75_v20, %v84_v28 }
 0x160   :  { %v89_v31 = vsel %vm87_vm5, %v88_v29, %v86_v30 }
 0x161   :  { %v91_v32 = vadd.f32 1e-06, %v89_v31 }
 0x163   :  { %280 = vrcp.f32 %v91_v32 }
 0x169   :  { %v279_v34 = vpop.eup %278 }
 0x16a   :  { %v103_v35 = vmul.f32 %v279_v34, %v246_v33 }
 0x16c   :  { %v105_v38 = vmul.f32 %v103_v35, %v64_v6  ;;  %v215_v6 = vshrl.u32 %v213_v4, 16 }
 0x16d   :  { %v281_v36 = vpop.eup %280 }
 0x16e   :  { %v104_v37 = vmul.f32 %v281_v36, %v246_v33  ;;  %v114_v41 = vadd.f32 %v247_v39, %v105_v38 }
 0x170   :  { %v106_v40 = vmul.f32 %v104_v37, %v65_v10  ;;  %v217_v10 = vxor.u32 %v215_v6, %v213_v4 }
 0x172   :  { %v115_v42 = vadd.f32 %v247_v39, %v106_v40  ;;  %vm219_vm7 = vcmp.ge.u32.totalorder %v217_v10, 429496730 }
 0x174   :  { %v116_v43 = vpack.c.bf16 %v115_v42, %v114_v41 }
 0x176   :  { %260 = vmatmul.mubr.msk.bf16.vlgmr.msra.gmra.mrb[0].mxu0 %vm54_vm0, %v116_v43 }
 0x249   :  { %v177_v9 = vpop.f32.mrb[0].mxu0 }
 0x24a   :  { %v178_v11 = vadd.f32 %v248_v7, %v177_v9  ;;  %v261_v12 = vpop.f32.mrb[1].mxu0 }
 0x24b   :  { %v180_v13 = vpop.f32.mrb[2].mxu0 }
 0x24c   :  { %v220_v14 = vmul.f32 1.1111112, %v178_v11  ;;  %v181_v15 = vadd.f32 %v248_v7, %v180_v13  ;;  %v262_v16 = vpop.f32.mrb[3].mxu0 }
 0x24e   :  { %v222_v17 = vsel %vm218_vm6, %v220_v14, 0.0  ;;  %v221_v18 = vmul.f32 1.1111112, %v181_v15 }
 0x24f   :  { %v224_v19 = vadd.f32 %v222_v17, %v425_v0 }
 0x250   :  { %v223_v20 = vsel %vm219_vm7, %v221_v18, 0.0 }
 0x251   :  { %226 = vst.msk [vmem:[#allocation9] sm:$0xff] %vm54_vm0, %v224_v19  ;;  %v225_v21 = vadd.f32 %v223_v20, %v427_v1 }
 0x253   :  { %227 = vst.msk [vmem:[#allocation9 + $0x8] sm:$0xff] %vm54_vm0, %v225_v21 }
 0x254   :  { %337 = shalt.err (!%p334_p6)
}
 0x255   :  { %s338_s11 = scalar_lea.hbm %s475_s6, 256 }
 0x256   :  { %p339_p7 = scmp.ne.s32.totalorder %s475_s6, %s338_s11  ;;  %p342_p8 = scmp.lt.u32.totalorder %s338_s11, %s475_s6 }
 0x258   :  { %p344_p9 = pnand %p342_p8, %p339_p7 }
 0x25a   :  { %347 = shalt.err (!%p344_p9)
}
 0x25b   :  { %239 = dma.vmem_to_hbm [thread:$0]  %s234_s30, 256, %s475_s6, [#allocation6], %s355_s7, %s355_s7, %s356_s8  }
 0x25c   :  { %352 = dma.done.wait [#allocation6], 256  }
 0x25d   :  { %353 = vsyncadd [#allocation6], 4294967040 }
 0x25e   :  { %243 = vsyncpa [#allocation5], 1 }
 0x25f   :  { %244 = vsyncpa [#allocation8], 1 }
 0x260   :  { %245 = vsyncpa [#allocation6], 1 }

</bundles_post_ra>
